<compile_context>
chip_gen: v5e
topology: v5e:2x2
jax: 0.10.0
libtpu: 0.0.40
codegen_flags: <defaults>
</compile_context>

<pallas_src>
import functools

import jax
import jax.numpy as jnp
from jax.experimental import pallas as pl
from jax.experimental.pallas import tpu as pltpu


# ----------------------------------------------------------------------------
# VMEM budget / strip selection
# ----------------------------------------------------------------------------
def _vmem_limit_bytes():
    """Per-generation scoped VMEM limit: ~48 MiB on v7x (64 MiB phys), ~96 MiB on v5e/v6e."""
    try:
        phys = int(pltpu.get_tpu_info().vmem_capacity_bytes)
    except Exception:
        phys = 64 * 1024 * 1024
    return int(min(phys * 3 // 4, 100 * 1024 * 1024))


def _pick_strip(oh, per_row_bytes, fixed_bytes, budget):
    """Largest H strip (multiple of 8, dividing oh, leaving >= 2 grid steps per image)
    whose per-step VMEM footprint fits the budget; falls back to the full height."""
    if oh < 16 or oh % 8 != 0:
        return oh
    cands = [s for s in range(8, oh // 2 + 1, 8) if oh % s == 0]
    if not cands:
        return oh
    fitting = [s for s in cands if fixed_bytes + s * per_row_bytes <= budget]
    return max(fitting) if fitting else min(cands)


# ----------------------------------------------------------------------------
# Pallas kernels
# ----------------------------------------------------------------------------
def _stem_matmul_kernel(p_ref, w_ref, affine_ref, o_ref):
    # p_ref:      (1, TM, K)            bf16  pre-im2col'ed patch rows (TM = strip*W)
    # w_ref:      (K, Cout)             bf16
    # affine_ref: (2, Cout)             f32   row0 = scale, row1 = shift (bias)
    # o_ref:      (1, strip, W, Cout)   bf16
    _, strip, w, cout = o_ref.shape
    acc = jnp.dot(p_ref[0], w_ref[...], preferred_element_type=jnp.float32)
    y = acc * affine_ref[pl.ds(0, 1), :] + affine_ref[pl.ds(1, 1), :]
    o_ref[...] = y.reshape(1, strip, w, cout).astype(o_ref.dtype)


def _stage_conv_kernel(x_ref, halo_ref, w_ref, affine_ref, o_ref, *, apply_silu):
    # x_ref:      (NB, strip, Wp, Cin)  bf16  main input rows (space-to-depth, pre-padded L/T)
    # halo_ref:   (NB, 1, Wp, Cin)      bf16  the single row just below the strip
    # w_ref:      (4, Cin, Cout)        bf16  per-tap weights of the 2x2 stride-1 conv
    # affine_ref: (2, Cout)             f32   folded-BN scale / shift
    # o_ref:      (NB, strip, OW, Cout) bf16
    nb, strip, ow, cout = o_ref.shape
    cin = x_ref.shape[-1]
    m = nb * strip * ow

    acc = jnp.zeros((m, cout), jnp.float32)
    t = 0
    for kh in range(2):
        for kw in range(2):
            parts = []
            if strip - kh > 0:
                parts.append(x_ref[:, pl.ds(kh, strip - kh), pl.ds(kw, ow), :])
            if kh > 0:
                parts.append(halo_ref[:, pl.ds(0, kh), pl.ds(kw, ow), :])
            tap = parts[0] if len(parts) == 1 else jnp.concatenate(parts, axis=1)
            acc = acc + jnp.dot(tap.reshape(m, cin), w_ref[t],
                                preferred_element_type=jnp.float32)
            t += 1

    y = acc * affine_ref[pl.ds(0, 1), :] + affine_ref[pl.ds(1, 1), :]
    if apply_silu:
        y = y * jax.nn.sigmoid(y)
    # TODO(synk): lane-dense store (merge OW into the lane dim, (strip, OW*Cout)) once the
    #             required sublane->lane reshape is verified to lower on all targets.
    # TODO(synk): fuse space-to-depth + top/left halo pad of the *next* stage into this
    #             epilogue (needs the same relayout support) to drop the wrapper pass.
    o_ref[...] = y.reshape(nb, strip, ow, cout).astype(o_ref.dtype)


# ----------------------------------------------------------------------------
# pallas_call wrappers
# ----------------------------------------------------------------------------
def _stem_call(patches, w, affine, h, w_sp, *, vmem_limit):
    n, m, k = patches.shape
    cout = w.shape[-1]
    per_row = 2 * w_sp * k * 2 + 2 * w_sp * cout * 2 + w_sp * cout * 4
    fixed = k * cout * 2 * 2 + 4 * cout + 4096
    strip = _pick_strip(h, per_row, fixed, vmem_limit // 2)
    tm = strip * w_sp
    grid = (n, h // strip)
    return pl.pallas_call(
        _stem_matmul_kernel,
        out_shape=jax.ShapeDtypeStruct((n, h, w_sp, cout), jnp.bfloat16),
        grid=grid,
        in_specs=[
            pl.BlockSpec((1, tm, k), lambda b, s: (b, s, 0)),
            pl.BlockSpec((k, cout), lambda b, s: (0, 0)),
            pl.BlockSpec((2, cout), lambda b, s: (0, 0)),
        ],
        out_specs=pl.BlockSpec((1, strip, w_sp, cout), lambda b, s: (b, s, 0, 0)),
        compiler_params=pltpu.CompilerParams(
            dimension_semantics=("parallel", "parallel"),
            vmem_limit_bytes=vmem_limit),
    )(patches, w, affine)


def _stage_call(zp, w_taps, affine, *, apply_silu, vmem_limit):
    n, hp, wp, cin = zp.shape
    oh, ow = hp - 1, wp - 1
    cout = w_taps.shape[-1]

    # Fold the batch into the matmul M dimension for the tiny tail stages (spatial <= 4x4).
    fold_batch = (oh * ow) <= 16
    nb = n if fold_batch else 1

    per_row = nb * (2 * wp * cin * 2 + 2 * ow * cout * 2 + ow * cout * 4)
    fixed = nb * wp * cin * 2 * 2 + 4 * cin * cout * 2 * 2 + 4 * cout + 4096
    strip = _pick_strip(oh, per_row, fixed, vmem_limit // 2)
    grid = (n // nb, oh // strip)

    kernel = functools.partial(_stage_conv_kernel, apply_silu=apply_silu)
    halo_map = lambda b, s, _strip=strip: (b, (s + 1) * _strip, 0, 0)
    return pl.pallas_call(
        kernel,
        out_shape=jax.ShapeDtypeStruct((n, oh, ow, cout), jnp.bfloat16),
        grid=grid,
        in_specs=[
            pl.BlockSpec((nb, strip, wp, cin), lambda b, s: (b, s, 0, 0)),   # main rows
            pl.BlockSpec((nb, 1, wp, cin), halo_map),                        # 1-row halo
            pl.BlockSpec((4, cin, cout), lambda b, s: (0, 0, 0)),
            pl.BlockSpec((2, cout), lambda b, s: (0, 0)),
        ],
        out_specs=pl.BlockSpec((nb, strip, ow, cout), lambda b, s: (b, s, 0, 0)),
        compiler_params=pltpu.CompilerParams(
            dimension_semantics=("parallel", "parallel"),
            vmem_limit_bytes=vmem_limit),
    )(zp, zp, w_taps, affine)


# ----------------------------------------------------------------------------
# Wrapper-side data prep (XLA): stem im2col, space-to-depth, weight re-indexing
# ----------------------------------------------------------------------------
def _stem_im2col(x_f32):
    """NHWC f32 (N,H,W,3) -> (N, H*W, 32) bf16 lane-dense im2col patch matrix (K 27->32)."""
    n, h, w, _ = x_f32.shape
    xp = jnp.pad(x_f32.astype(jnp.bfloat16), ((0, 0), (1, 1), (1, 1), (0, 0)))
    taps = [xp[:, i:i + h, j:j + w, :] for i in range(3) for j in range(3)]
    p = jnp.concatenate(taps, axis=-1)                       # (N,H,W,27)
    p = jnp.pad(p, ((0, 0), (0, 0), (0, 0), (0, 5)))         # pad K 27 -> 32
    return p.reshape(n, h * w, 32)


def _space_to_depth(x):
    """NHWC (H, W even) -> (N, H/2, W/2, 4*C); channel index = (ph*2+pw)*C + ci."""
    n, h, w, c = x.shape
    # TODO(synk): ceil-pad odd spatial sizes (and crop outputs) for full stride-2 pad-1 fidelity.
    assert h % 2 == 0 and w % 2 == 0, (h, w)
    x = x.reshape(n, h // 2, 2, w // 2, 2, c)
    x = jnp.transpose(x, (0, 1, 3, 2, 4, 5))
    return x.reshape(n, h // 2, w // 2, 4 * c)


def _s2_conv3x3_to_s2d_taps(w3):
    """(3,3,Cin,Cout) stride-2 pad-1 conv weights -> (4, 4*Cin, Cout) per-tap weights for a
    stride-1 2x2 conv over the space-to-depth input padded by 1 at top/left."""
    _, _, cin, cout = w3.shape
    w2 = jnp.zeros((2, 2, 2, 2, cin, cout), w3.dtype)        # (bp, bq, ph, pw, ci, co)
    for bp in range(2):
        for ph in range(2):
            kh = 2 * bp + ph - 1
            if not (0 <= kh <= 2):
                continue
            for bq in range(2):
                for pw in range(2):
                    kw = 2 * bq + pw - 1
                    if not (0 <= kw <= 2):
                        continue
                    w2 = w2.at[bp, bq, ph, pw].set(w3[kh, kw])
    return w2.reshape(4, 4 * cin, cout)


# ----------------------------------------------------------------------------
# Reference (for the numeric self-check in __main__)
# ----------------------------------------------------------------------------
def _ref_conv_bn_act(x_nhwc, w3, scale, shift, *, stride, apply_silu):
    y = jax.lax.conv_general_dilated(
        x_nhwc.astype(jnp.bfloat16), w3.astype(jnp.bfloat16),
        window_strides=(stride, stride), padding=((1, 1), (1, 1)),
        dimension_numbers=("NHWC", "HWIO", "NHWC"),
        preferred_element_type=jnp.float32)
    y = y * scale.reshape(1, 1, 1, -1) + shift.reshape(1, 1, 1, -1)
    if apply_silu:
        y = y * jax.nn.sigmoid(y)
    return y


# ----------------------------------------------------------------------------
# EfficientEncoder in JAX/Pallas
# ----------------------------------------------------------------------------
_LIST_FEATS = {
    "efficientnet-b0": [32, 32, 24, 40, 112, 320],
    "efficientnet-b1": [32, 32, 24, 40, 112, 320],
    "efficientnet-b2": [32, 32, 24, 48, 120, 352],
    "efficientnet-b3": [32, 40, 32, 48, 136, 384],
    "efficientnet-b4": [32, 48, 32, 56, 160, 448],
    "efficientnet-b5": [32, 48, 40, 64, 176, 512],
    "efficientnet-b6": [32, 56, 40, 72, 200, 576],
    "efficientnet-b7": [32, 64, 48, 80, 224, 640],
}


class EfficientEncoderPallas:
    def __init__(self, backbone="efficientnet-b4", seed=42):
        self.list_feats = _LIST_FEATS[backbone]
        self._vmem_limit = _vmem_limit_bytes()
        key = jax.random.PRNGKey(seed)
        keys = iter(jax.random.split(key, 64))

        # --- stem: DynamicConv2d(3, 32): 3x3, stride 1, "same" pad, bias, no act ---
        stem_out = self.list_feats[0]
        self.stem_w3 = (jax.random.normal(next(keys), (3, 3, 3, stem_out), jnp.float32)
                        * (1.0 / jnp.sqrt(3.0 * 9.0)))
        self.stem_scale = jnp.ones((stem_out,), jnp.float32)
        self.stem_shift = jax.random.normal(next(keys), (stem_out,), jnp.float32) * 0.01
        stem_flat = self.stem_w3.reshape(27, stem_out)
        self.stem_w = jnp.pad(stem_flat, ((0, 5), (0, 0))).astype(jnp.bfloat16)   # (32, 32)
        self.stem_affine = jnp.stack([self.stem_scale, self.stem_shift], axis=0)

        # --- frozen backbone stages (synthetic): conv3x3 s2 -> folded BN -> SiLU ---
        in_chs = [3] + self.list_feats[1:-1]
        out_chs = self.list_feats[1:]
        self.stages = []       # (w_taps bf16 (4, 4*cin, cout), affine f32 (2, cout))
        self.stage_raw = []    # (w3, scale, shift) kept for the reference check
        eps = 1e-3
        for cin, cout in zip(in_chs, out_chs):
            w3 = (jax.random.normal(next(keys), (3, 3, cin, cout), jnp.float32)
                  * (1.0 / jnp.sqrt(cin * 9.0)))
            gamma = 0.5 + jax.random.uniform(next(keys), (cout,), jnp.float32)
            beta = jax.random.normal(next(keys), (cout,), jnp.float32) * 0.01
            mean = jax.random.normal(next(keys), (cout,), jnp.float32) * 0.01
            var = 0.5 + jax.random.uniform(next(keys), (cout,), jnp.float32)
            scale = gamma / jnp.sqrt(var + eps)        # frozen BN folded into affine
            shift = beta - mean * scale
            w_taps = _s2_conv3x3_to_s2d_taps(w3).astype(jnp.bfloat16)
            affine = jnp.stack([scale, shift], axis=0).astype(jnp.float32)
            self.stages.append((w_taps, affine))
            self.stage_raw.append((w3, scale, shift))

    def __call__(self, color_nchw):
        vmem_limit = self._vmem_limit
        x = jnp.transpose(color_nchw, (0, 2, 3, 1)).astype(jnp.float32)   # NCHW -> NHWC
        n, h, w, _ = x.shape

        # stem: pre-im2col in the wrapper (3-channel input), one dense matmul in the kernel.
        patches = _stem_im2col(x)
        shallow = _stem_call(patches, self.stem_w, self.stem_affine, h, w,
                             vmem_limit=vmem_limit)

        # backbone stages: stride-2 conv rewritten as 2x2 stride-1 conv over space-to-depth
        # input, all inter-stage activations stay bf16.
        deep = []
        feat = x.astype(jnp.bfloat16)
        for (w_taps, affine) in self.stages:
            # TODO(synk): fuse the space-to-depth + top/left pad into the producing kernel's
            #             epilogue; for now it is one fused XLA transpose+pad pass on bf16.
            zp = jnp.pad(_space_to_depth(feat), ((0, 0), (1, 0), (1, 0), (0, 0)))
            feat = _stage_call(zp, w_taps, affine, apply_silu=True, vmem_limit=vmem_limit)
            deep.append(feat)

        feats = [shallow] + deep
        # API boundary: NCHW float32 like the PyTorch module (inter-stage stays bf16).
        return [jnp.transpose(f, (0, 3, 1, 2)).astype(jnp.float32) for f in feats]


if __name__ == "__main__":
    key = jax.random.PRNGKey(0)
    color = jax.random.normal(key, (2, 3, 32, 32), jnp.float32)   # NCHW, like PyTorch

    encoder = EfficientEncoderPallas("efficientnet-b4")
    feats = jax.block_until_ready(encoder(color))

    expected = [
        (2, 32, 32, 32),    # stem (stride 1)
        (2, 48, 16, 16),    # stride 2
        (2, 32, 8, 8),      # stride 4
        (2, 56, 4, 4),      # stride 8
        (2, 160, 2, 2),     # stride 16
        (2, 448, 1, 1),     # stride 32
    ]
    for f, e in zip(feats, expected):
        assert tuple(f.shape) == e, (tuple(f.shape), e)
        assert bool(jnp.all(jnp.isfinite(f))), "non-finite feature map"

    # Numeric self-check of the fused kernels against lax.conv (bf16 operands, f32 accum).
    x_nhwc = jnp.transpose(color, (0, 2, 3, 1))

    stem_ref = _ref_conv_bn_act(x_nhwc, encoder.stem_w3, encoder.stem_scale,
                                encoder.stem_shift, stride=1, apply_silu=False)
    stem_got = jnp.transpose(feats[0], (0, 2, 3, 1))
    stem_err = float(jnp.max(jnp.abs(stem_got - stem_ref)))
    assert stem_err < 1e-1, f"stem mismatch: {stem_err}"

    # Per-stage check: feed the kernel's own (bf16) previous-stage output into the reference
    # so each comparison isolates a single stage's error (bf16 store rounding only).
    prev = x_nhwc
    for i, (w3, sc, sh) in enumerate(encoder.stage_raw):
        ref = _ref_conv_bn_act(prev, w3, sc, sh, stride=2, apply_silu=True)
        got = jnp.transpose(feats[i + 1], (0, 2, 3, 1))
        tol = 1e-1 + 2e-2 * float(jnp.max(jnp.abs(ref)))
        err = float(jnp.max(jnp.abs(got - ref)))
        assert err < tol, f"stage {i + 1} mismatch: {err} (tol {tol})"
        prev = got.astype(jnp.bfloat16)

    print("KERNEL_OK")
</pallas_src>

<mosaic_0001>
module attributes {stable_mosaic.version = 11 : i64} {
  func.func @_stem_matmul_kernel(%arg0: i32, %arg1: i32, %arg2: memref<1x512x32xbf16, #tpu.memory_space<vmem>>, %arg3: memref<32x32xbf16, #tpu.memory_space<vmem>>, %arg4: memref<2x32xf32, #tpu.memory_space<vmem>>, %arg5: memref<1x16x32x32xbf16, #tpu.memory_space<vmem>>) attributes {dimension_semantics = [#tpu.dimension_semantics<parallel>, #tpu.dimension_semantics<parallel>], iteration_bounds = array<i64: 2, 2>, scalar_prefetch = 0 : i64, scratch_operands = 0 : i64, tpu.core_type = #tpu.core_type<tc>, window_params = [{transform_indices = @transform_0, window_bounds = array<i64: 1, 512, 32>}, {pipeline_mode = #tpu.pipeline_mode<synchronous>, transform_indices = @transform_1, window_bounds = array<i64: 32, 32>}, {pipeline_mode = #tpu.pipeline_mode<synchronous>, transform_indices = @transform_2, window_bounds = array<i64: 2, 32>}, {transform_indices = @transform_3, window_bounds = array<i64: 1, 16, 32, 32>}]} {
    %c0 = arith.constant 0 : index
    %c0_0 = arith.constant 0 : index
    %c0_1 = arith.constant 0 : index
    %0 = vector.load %arg2[%c0, %c0_0, %c0_1] : memref<1x512x32xbf16, #tpu.memory_space<vmem>>, vector<1x512x32xbf16>
    %1 = vector.shape_cast %0 : vector<1x512x32xbf16> to vector<512x32xbf16>
    %c0_2 = arith.constant 0 : index
    %c0_3 = arith.constant 0 : index
    %2 = vector.load %arg3[%c0_2, %c0_3] : memref<32x32xbf16, #tpu.memory_space<vmem>>, vector<32x32xbf16>
    %cst = arith.constant dense<0.000000e+00> : vector<512x32xf32>
    %3 = tpu.matmul %1, %2, %cst {dimension_numbers = #tpu.dot_dimension_numbers<[1], [0], [0], [1], [0, 0, 1, 1], [], []>} : vector<512x32xbf16>, vector<32x32xbf16>, vector<512x32xf32> -> vector<512x32xf32>
    %c0_4 = arith.constant 0 : index
    %c0_5 = arith.constant 0 : index
    %4 = vector.load %arg4[%c0_4, %c0_5] : memref<2x32xf32, #tpu.memory_space<vmem>>, vector<1x32xf32>
    %5 = vector.broadcast %4 : vector<1x32xf32> to vector<512x32xf32>
    %6 = arith.mulf %3, %5 : vector<512x32xf32>
    %c1 = arith.constant 1 : index
    %c0_6 = arith.constant 0 : index
    %7 = vector.load %arg4[%c1, %c0_6] : memref<2x32xf32, #tpu.memory_space<vmem>>, vector<1x32xf32>
    %8 = vector.broadcast %7 : vector<1x32xf32> to vector<512x32xf32>
    %9 = arith.addf %6, %8 : vector<512x32xf32>
    %10 = vector.shape_cast %9 : vector<512x32xf32> to vector<1x16x32x32xf32>
    %11 = arith.truncf %10 : vector<1x16x32x32xf32> to vector<1x16x32x32xbf16>
    %c0_7 = arith.constant 0 : index
    %c0_8 = arith.constant 0 : index
    %c0_9 = arith.constant 0 : index
    %c0_10 = arith.constant 0 : index
    %12 = vector.load %arg5[%c0_7, %c0_8, %c0_9, %c0_10] : memref<1x16x32x32xbf16, #tpu.memory_space<vmem>>, vector<1x16x32x32xbf16>
    tpu.vector_store %arg5[%c0_7, %c0_8, %c0_9, %c0_10], %11 {strides = array<i32>} : memref<1x16x32x32xbf16, #tpu.memory_space<vmem>>, vector<1x16x32x32xbf16>,
    return
  }
  func.func @transform_0(%arg0: i32, %arg1: i32) -> (i32, i32, i32) {
    %c0_i32 = arith.constant 0 : i32
    %c0_i32_0 = arith.constant 0 : i32
    return %arg0, %arg1, %c0_i32 : i32, i32, i32
  }
  func.func @transform_1(%arg0: i32, %arg1: i32) -> (i32, i32) {
    %c0_i32 = arith.constant 0 : i32
    %c0_i32_0 = arith.constant 0 : i32
    %c0_i32_1 = arith.constant 0 : i32
    return %c0_i32, %c0_i32_0 : i32, i32
  }
  func.func @transform_2(%arg0: i32, %arg1: i32) -> (i32, i32) {
    %c0_i32 = arith.constant 0 : i32
    %c0_i32_0 = arith.constant 0 : i32
    %c0_i32_1 = arith.constant 0 : i32
    return %c0_i32, %c0_i32_0 : i32, i32
  }
  func.func @transform_3(%arg0: i32, %arg1: i32) -> (i32, i32, i32, i32) {
    %c0_i32 = arith.constant 0 : i32
    %c0_i32_0 = arith.constant 0 : i32
    %c0_i32_1 = arith.constant 0 : i32
    return %arg0, %arg1, %c0_i32, %c0_i32_0 : i32, i32, i32, i32
  }
}

</mosaic_0001>

<bundles_post_ra>
// kernel: tpu_custom_call.1
= control target key start
LH: loop header
LB: loop body
LE: loop exit
PB: predicated region body
PF: predicated region fallthrough
CT: control target
= control target key end

     0   :  { %8 = vsyncpa [#allocation3], 0  ;;  %s1957_s0 = inlined_call_operand.vmem [shape: bf16[2,1024,32], index: 0, kind: input, shape index: {}]   ;;  %s1958_s1 = inlined_call_operand.vmem [shape: bf16[32,32], index: 1, kind: input, shape index: {}]   ;;  %s1959_s2 = inlined_call_operand.vmem [shape: f32[2,32], index: 2, kind: input, shape index: {}]   ;;  %s1960_s3 = inlined_call_operand.hbm [shape: bf16[2,32,32,32], index: 3, kind: output, shape index: {}]  }
   0x1   :  { %10 = vsyncpa [#allocation3 + $0x1], 0  ;;  %s1487_s12 = smov 0   ;;  %s1489_s13 = smov 0  }
   0x2   :  { %s1491_s14 = smov 0   ;;  %s1493_s15 = smov 0  }
   0x3   :  { %s1495_s16 = smov 0   ;;  %s1497_s17 = smov 0  }
   0x4   :  { %s1499_s18 = smov 0   ;;  %s1501_s19 = smov 0  }
   0x5 LB: > { %s1069_s20 = sadd.s32 4294967295, %s1463_s19   ;;  %s1070_s21 = sadd.s32 4294967294, %s1463_s19   ;;  %s1463_s19 = sphi %s1501_s19, %s16_s19   ;;  %s1459_s18 = sphi %s1499_s18, %s1969_s18   ;;  %s1455_s17 = sphi %s1497_s17, %s1968_s17   ;;  %s1451_s16 = sphi %s1495_s16, %s1967_s16   ;;  %s1447_s15 = sphi %s1493_s15, %s1966_s15   ;;  %s1443_s14 = sphi %s1491_s14, %s1965_s14   ;;  %s1439_s13 = sphi %s1489_s13, %s1964_s13   ;;  %s1435_s12 = sphi %s1487_s12, %s1963_s12  }
   0x6   : > { %s25_s22 = sadd.s32 1, %s1455_s17  ;;  %s28_s23 = sadd.s32 1, %s1459_s18 }
   0x7   : > { %p26_p0 = scmp.ge.s32.totalorder %s25_s22, 2  ;;  %p117_p1 = scmp.ne.s32.totalorder %s1443_s14, %s1439_s13 }
   0x8   : > { %p118_p2 = scmp.eq.s32.totalorder %s1069_s20, 3  ;;  %p123_p5 = scmp.ne.s32.totalorder %s1439_s13, %s1435_s12 }
   0x9   : > { %s1971_s22 = smov (%p26_p0, %s25_s22), 0  ;;  %s1973_s23 = smov (!%p26_p0, %s28_s23), %s1459_s18 }
   0xa   : > { %s103_s24 = ssub.s32 %s1455_s17, %s1971_s22  ;;  %p1538_p3 = por %p118_p2, %p117_p1 }
   0xb   : > { %p30_p4 = scmp.ge.s32.totalorder %s1973_s23, 2  ;;  %p124_p6 = scmp.eq.s32.totalorder %s1070_s21, 3 }
   0xc   : > { %p1073_p7 = scmp.ge.s32.totalorder %s1463_s19, 1  ;;  %p161_p9 = scmp.lt.s32.totalorder %s1463_s19, 5 }
   0xd   : > { %s1975_s23 = smov (%p30_p4, %s1973_s23), 0  ;;  %p1547_p8 = por %p124_p6, %p123_p5 }
   0xe   : > { %s102_s27 = ssub.s32 %s1459_s18, %s1975_s23  ;;  %s107_s28 = sadd.s32 1, %s1443_s14 }
   0xf   : > { %s104_s29 = sor.u32 %s103_s24, %s102_s27  ;;  %p162_p10 = pnand %p1073_p7, %p161_p9 }
  0x10   : > { %p105_p11 = scmp.eq.s32.totalorder %s104_s29, 0  ;;  %s1562_s6 = sshll.u32 (!%p162_p10), %s1447_s15, 6 }
  0x11   : > { %165 = sbr.rel (%p162_p10) target bundleno = 294 (0x126), region = 32  ;;  %p190_p12 = scmp.lt.s32.totalorder (!%p162_p10), %s1451_s16, 1 }
  0x12   : > { %s1556_s30 = scalar_select %p105_p11, %s1443_s14, %s107_s28  }
  0x13   : > { %p192_p13 = scmp.lt.s32.totalorder (!%p162_p10), %s1562_s6, 127  ;;  %s186_s4 = sand.u32 (!%p162_p10), 1, %s1439_s13  }
  0x14   : > { %s1074_s8 = sshll.u32 (!%p162_p10), %s186_s4, 8 }
  0x16   : > { %v1286_v0 = vld [vmem:[%s1958_s1 + $0x8] sm:$0xff]  ;;  %v1285_v1 = vld [vmem:[%s1958_s1] sm:$0xff]  ;;  %s191_s9 = scalar_select %p190_p12, %s1451_s16, 1  ;;  %vm441_vm0 = vcmask 261120   ;;  %vm903_vm1 = vcmask 257024  }
  0x17   : > { %544 = vmatpush.bf16.msra.mxu0 %v1286_v0  ;;  %1288 = vmatpush.bf16.msra.mxu1 %v1286_v0  ;;  %s193_s10 = scalar_select %p192_p13, %s1562_s6, 127  ;;  %v1643_v34 = vld [vmem:[%s1959_s2] ss:$0 sm:$0xff]  ;;  %v1649_v35 = vld [vmem:[%s1959_s2 + $0x1] ss:$0 sm:$0xff] }
  0x18   : > { %1289 = vmatpush.bf16.msra.mxu2 %v1286_v0  ;;  %1290 = vmatpush.bf16.msra.mxu3 %v1286_v0  ;;  %s1076_s11 = sshll.u32 %s191_s9, 7  ;;  %s1657_s9 = scalar_lea.vmem [#allocation2], %s1074_s8 }
  0x19   : > { %s195_s20 = sadd.s32 %s1076_s11, %s193_s10  ;;  %s1249_s10 = sshll.u32 %s1451_s16, 7 }
  0x1a   : > { %s1077_s15 = sshll.u32 %s195_s20, 2  ;;  %s981_s11 = sadd.s32 %s1249_s10, %s1562_s6 }
  0x1b   : > { %545 = vmatpush.bf16.msra.mxu0 %v1285_v1  ;;  %1291 = vmatpush.bf16.msra.mxu1 %v1285_v1  ;;  %s1574_s27 = scalar_lea.vmem %s1957_s0, %s1077_s15  ;;  %s1250_s16 = sshll.u32 %s981_s11, 2 }
  0x1c   : > { %1292 = vmatpush.bf16.msra.mxu2 %v1285_v1  ;;  %1293 = vmatpush.bf16.msra.mxu3 %v1285_v1  ;;  %v1253_v2 = vld [vmem:[%s1574_s27] sm:$0xff]  ;;  %v1254_v6 = vld [vmem:[%s1574_s27 + $0x8] sm:$0xff]  ;;  %v1255_v10 = vld [vmem:[%s1574_s27 + $0x10] sm:$0xff]  ;;  %s983_s15 = scalar_lea.hbm %s1960_s3, %s1250_s16  ;;  %s984_s24 = sshll.u32 %s1657_s9, 4  ;;  %s985_s24 = int_to_ptr.vmem [resolvable:$true] %s984_s24 }
  0x1d   : > { %v1261_v3 = vld [vmem:[%s1574_s27 + $0x40] sm:$0xff]  ;;  %v1262_v7 = vld [vmem:[%s1574_s27 + $0x48] sm:$0xff]  ;;  %v1263_v11 = vld [vmem:[%s1574_s27 + $0x50] sm:$0xff]  ;;  %s986_s21 = sshll.u32 %s983_s15, 4  ;;  %s1389_s8 = scalar_lea.hbm %s1960_s3, 1024  ;;  %s987_s21 = int_to_ptr.hbm [resolvable:$true] %s986_s21 }
  0x1e   : > { %v1269_v4 = vld [vmem:[%s1574_s27 + $0x80] sm:$0xff]  ;;  %1214 = vmatmul.msk.bf16.vlgmr.msra.gmra.mxu0 %vm441_vm0, %v1253_v2  ;;  %1222 = vmatmul.msk.bf16.vlgmr.msra.gmra.mxu1 %vm441_vm0, %v1261_v3  ;;  %v1270_v8 = vld [vmem:[%s1574_s27 + $0x88] sm:$0xff]  ;;  %v1271_v12 = vld [vmem:[%s1574_s27 + $0x90] sm:$0xff]  ;;  %s1383_s28 = sshra.s32 %s987_s21, 4  ;;  %s1384_s28 = int_to_ptr.hbm [resolvable:$true] %s1383_s28 }
  0x1f   : > { %v1277_v5 = vld [vmem:[%s1574_s27 + $0xc0] sm:$0xff]  ;;  %1230 = vmatmul.msk.bf16.vlgmr.msra.gmra.mxu2 %vm441_vm0, %v1269_v4  ;;  %v1278_v9 = vld [vmem:[%s1574_s27 + $0xc8] sm:$0xff]  ;;  %v1279_v13 = vld [vmem:[%s1574_s27 + $0xd0] sm:$0xff]  ;;  %s1385_s29 = scalar_lea.hbm %s1384_s28, 256  ;;  %p1390_p4 = scmp.lt.s32.totalorder %s1384_s28, %s1960_s3 }
  0x20   : > { %1238 = vmatmul.msk.bf16.vlgmr.msra.gmra.mxu3 %vm441_vm0, %v1277_v5  ;;  %v1256_v14 = vld [vmem:[%s1574_s27 + $0x18] sm:$0xff]  ;;  %v1257_v18 = vld [vmem:[%s1574_s27 + $0x20] sm:$0xff]  ;;  %v1258_v22 = vld [vmem:[%s1574_s27 + $0x28] sm:$0xff]  ;;  %p1386_p0 = scmp.ne.s32.totalorder %s1384_s28, %s1385_s29  ;;  %p1391_p5 = scmp.lt.s32.totalorder %s1389_s8, %s1385_s29 }
  0x21   : > { %v1264_v15 = vld [vmem:[%s1574_s27 + $0x58] sm:$0xff]  ;;  %v1265_v19 = vld [vmem:[%s1574_s27 + $0x60] sm:$0xff]  ;;  %v1266_v23 = vld [vmem:[%s1574_s27 + $0x68] sm:$0xff] }
  0x22   : > { %v1272_v16 = vld [vmem:[%s1574_s27 + $0x98] sm:$0xff]  ;;  %v1273_v20 = vld [vmem:[%s1574_s27 + $0xa0] sm:$0xff]  ;;  %v1274_v24 = vld [vmem:[%s1574_s27 + $0xa8] sm:$0xff]  ;;  %p1387_p1 = pnand %p1386_p0, %p1538_p3  ;;  %p1392_p6 = por %p1391_p5, %p1390_p4 }
  0x23   : > { %v1280_v17 = vld [vmem:[%s1574_s27 + $0xd8] sm:$0xff]  ;;  %v1281_v21 = vld [vmem:[%s1574_s27 + $0xe0] sm:$0xff]  ;;  %v1282_v25 = vld [vmem:[%s1574_s27 + $0xe8] sm:$0xff] }
  0x24   : > { %v1259_v26 = vld [vmem:[%s1574_s27 + $0x30] sm:$0xff]  ;;  %v1260_v30 = vld [vmem:[%s1574_s27 + $0x38] sm:$0xff]  ;;  %p1388_p2 = pneg %p1387_p1 }
  0x25   : > { %v1267_v27 = vld [vmem:[%s1574_s27 + $0x70] sm:$0xff]  ;;  %v1268_v31 = vld [vmem:[%s1574_s27 + $0x78] sm:$0xff] }
  0x26   : > { %v1275_v28 = vld [vmem:[%s1574_s27 + $0xb0] sm:$0xff]  ;;  %v1276_v32 = vld [vmem:[%s1574_s27 + $0xb8] sm:$0xff]  ;;  %p1393_p7 = pnand %p1392_p6, %p1388_p2 }
  0x27   : > { %v1283_v29 = vld [vmem:[%s1574_s27 + $0xf0] sm:$0xff]  ;;  %v1284_v33 = vld [vmem:[%s1574_s27 + $0xf8] sm:$0xff]  ;;  %s969_s27 = scalar_lea.sflag [#allocation3], %s186_s4 }
  0x2e   : > { %1215 = vmatmul.msk.bf16.gmra.mxu0 %vm441_vm0, %v1254_v6  ;;  %1223 = vmatmul.msk.bf16.gmra.mxu1 %vm441_vm0, %v1262_v7 }
  0x2f   : > { %1231 = vmatmul.msk.bf16.gmra.mxu2 %vm441_vm0, %v1270_v8 }
  0x30   : > { %1239 = vmatmul.msk.bf16.gmra.mxu3 %vm441_vm0, %v1278_v9 }
  0x3e   : > { %1216 = vmatmul.msk.bf16.gmra.mxu0 %vm441_vm0, %v1255_v10  ;;  %1224 = vmatmul.msk.bf16.gmra.mxu1 %vm441_vm0, %v1263_v11 }
  0x3f   : > { %1232 = vmatmul.msk.bf16.gmra.mxu2 %vm441_vm0, %v1271_v12 }
  0x40   : > { %1240 = vmatmul.msk.bf16.gmra.mxu3 %vm441_vm0, %v1279_v13 }
  0x4e   : > { %1217 = vmatmul.msk.bf16.gmra.mxu0 %vm441_vm0, %v1256_v14  ;;  %1225 = vmatmul.msk.bf16.gmra.mxu1 %vm441_vm0, %v1264_v15 }
  0x4f   : > { %1233 = vmatmul.msk.bf16.gmra.mxu2 %vm441_vm0, %v1272_v16 }
  0x50   : > { %1241 = vmatmul.msk.bf16.gmra.mxu3 %vm441_vm0, %v1280_v17 }
  0x5e   : > { %1218 = vmatmul.msk.bf16.gmra.mxu0 %vm441_vm0, %v1257_v18  ;;  %1226 = vmatmul.msk.bf16.gmra.mxu1 %vm441_vm0, %v1265_v19 }
  0x5f   : > { %1234 = vmatmul.msk.bf16.gmra.mxu2 %vm441_vm0, %v1273_v20 }
  0x60   : > { %1242 = vmatmul.msk.bf16.gmra.mxu3 %vm441_vm0, %v1281_v21 }
  0x6e   : > { %1219 = vmatmul.msk.bf16.gmra.mxu0 %vm441_vm0, %v1258_v22  ;;  %1227 = vmatmul.msk.bf16.gmra.mxu1 %vm441_vm0, %v1266_v23 }
  0x6f   : > { %1235 = vmatmul.msk.bf16.gmra.mxu2 %vm441_vm0, %v1274_v24 }
  0x70   : > { %1243 = vmatmul.msk.bf16.gmra.mxu3 %vm441_vm0, %v1282_v25 }
  0x7e   : > { %1220 = vmatmul.msk.bf16.gmra.mxu0 %vm441_vm0, %v1259_v26  ;;  %1228 = vmatmul.msk.bf16.gmra.mxu1 %vm441_vm0, %v1267_v27 }
  0x7f   : > { %1236 = vmatmul.msk.bf16.gmra.mxu2 %vm441_vm0, %v1275_v28 }
  0x80   : > { %1244 = vmatmul.msk.bf16.gmra.mxu3 %vm441_vm0, %v1283_v29 }
  0x8e   : > { %1221 = vmatmul.msk.bf16.gmra.mxu0 %vm441_vm0, %v1260_v30  ;;  %1229 = vmatmul.msk.bf16.gmra.mxu1 %vm441_vm0, %v1268_v31 }
  0x8f   : > { %1237 = vmatmul.msk.bf16.gmra.mxu2 %vm441_vm0, %v1276_v32 }
  0x90   : > { %1245 = vmatmul.msk.bf16.gmra.mxu3 %vm441_vm0, %v1284_v33 }
  0x9b   : > { %v547_v36 = vpop.f32.mrf.mxu0  ;;  %v587_v37 = vpop.f32.mrf.mxu1 }
  0x9c   : > { %v709_v38 = vmul.f32 %v1643_v34, %v547_v36  ;;  %v725_v39 = vmul.f32 %v1643_v34, %v587_v37 }
  0x9e   : > { %v775_v40 = vadd.f32 %v1649_v35, %v709_v38  ;;  %v791_v41 = vadd.f32 %v1649_v35, %v725_v39 }
  0xa0   : > { %v839_v42 = vpack.c.bf16 %v775_v40, %v775_v40  ;;  %v855_v43 = vpack.c.bf16 %v791_v41, %v791_v41 }
  0xa2   : > { %904 = vst.msk [vmem:[%s1657_s9] sm:$0xf] %vm903_vm1, %v839_v42  ;;  %v627_v44 = vpop.f32.mrf.mxu2 }
  0xa3   : > { %v667_v45 = vpop.f32.mrf.mxu3  ;;  %920 = vst.msk [vmem:[%s1657_s9 + $0x40] sm:$0xf] %vm903_vm1, %v855_v43  ;;  %v741_v46 = vmul.f32 %v1643_v34, %v627_v44  ;;  %v549_v48 = vpop.f32.mrf.mxu0 }
  0xa4   : > { %v757_v47 = vmul.f32 %v1643_v34, %v667_v45  ;;  %v589_v49 = vpop.f32.mrf.mxu1  ;;  %v710_v50 = vmul.f32 %v1643_v34, %v549_v48 }
  0xa5   : > { %v726_v51 = vmul.f32 %v1643_v34, %v589_v49  ;;  %v807_v52 = vadd.f32 %v1649_v35, %v741_v46 }
  0xa6   : > { %v823_v53 = vadd.f32 %v1649_v35, %v757_v47  ;;  %v776_v54 = vadd.f32 %v1649_v35, %v710_v50 }
  0xa7   : > { %v792_v55 = vadd.f32 %v1649_v35, %v726_v51  ;;  %v871_v56 = vpack.c.bf16 %v807_v52, %v807_v52 }
  0xa8   : > { %v887_v57 = vpack.c.bf16 %v823_v53, %v823_v53  ;;  %v840_v58 = vpack.c.bf16 %v776_v54, %v776_v54 }
  0xa9   : > { %v856_v59 = vpack.c.bf16 %v792_v55, %v792_v55  ;;  %936 = vst.msk [vmem:[%s1657_s9 + $0x80] sm:$0xf] %vm903_vm1, %v871_v56 }
  0xaa   : > { %952 = vst.msk [vmem:[%s1657_s9 + $0xc0] sm:$0xf] %vm903_vm1, %v887_v57  ;;  %v629_v60 = vpop.f32.mrf.mxu2 }
  0xab   : > { %v669_v61 = vpop.f32.mrf.mxu3  ;;  %905 = vst.msk [vmem:[%s1657_s9 + $0x4] sm:$0xf] %vm903_vm1, %v840_v58  ;;  %v742_v62 = vmul.f32 %v1643_v34, %v629_v60  ;;  %v552_v0 = vpop.f32.mrf.mxu0 }
  0xac   : > { %v758_v63 = vmul.f32 %v1643_v34, %v669_v61  ;;  %v592_v1 = vpop.f32.mrf.mxu1  ;;  %921 = vst.msk [vmem:[%s1657_s9 + $0x44] sm:$0xf] %vm903_vm1, %v856_v59  ;;  %v711_v2 = vmul.f32 %v1643_v34, %v552_v0 }
  0xad   : > { %v727_v3 = vmul.f32 %v1643_v34, %v592_v1  ;;  %v808_v4 = vadd.f32 %v1649_v35, %v742_v62 }
  0xae   : > { %v824_v5 = vadd.f32 %v1649_v35, %v758_v63  ;;  %v777_v6 = vadd.f32 %v1649_v35, %v711_v2 }
  0xaf   : > { %v793_v7 = vadd.f32 %v1649_v35, %v727_v3  ;;  %v872_v8 = vpack.c.bf16 %v808_v4, %v808_v4 }
  0xb0   : > { %v888_v9 = vpack.c.bf16 %v824_v5, %v824_v5  ;;  %v841_v10 = vpack.c.bf16 %v777_v6, %v777_v6 }
  0xb1   : > { %v857_v11 = vpack.c.bf16 %v793_v7, %v793_v7  ;;  %937 = vst.msk [vmem:[%s1657_s9 + $0x84] sm:$0xf] %vm903_vm1, %v872_v8 }
  0xb2   : > { %953 = vst.msk [vmem:[%s1657_s9 + $0xc4] sm:$0xf] %vm903_vm1, %v888_v9  ;;  %v632_v12 = vpop.f32.mrf.mxu2 }
  0xb3   : > { %v672_v13 = vpop.f32.mrf.mxu3  ;;  %906 = vst.msk [vmem:[%s1657_s9 + $0x8] sm:$0xf] %vm903_vm1, %v841_v10  ;;  %v743_v14 = vmul.f32 %v1643_v34, %v632_v12  ;;  %v554_v16 = vpop.f32.mrf.mxu0 }
  0xb4   : > { %v759_v15 = vmul.f32 %v1643_v34, %v672_v13  ;;  %v594_v17 = vpop.f32.mrf.mxu1  ;;  %922 = vst.msk [vmem:[%s1657_s9 + $0x48] sm:$0xf] %vm903_vm1, %v857_v11  ;;  %v712_v18 = vmul.f32 %v1643_v34, %v554_v16 }
  0xb5   : > { %v728_v19 = vmul.f32 %v1643_v34, %v594_v17  ;;  %v809_v20 = vadd.f32 %v1649_v35, %v743_v14 }
  0xb6   : > { %v825_v21 = vadd.f32 %v1649_v35, %v759_v15  ;;  %v778_v22 = vadd.f32 %v1649_v35, %v712_v18 }
  0xb7   : > { %v794_v23 = vadd.f32 %v1649_v35, %v728_v19  ;;  %v873_v24 = vpack.c.bf16 %v809_v20, %v809_v20 }
  0xb8   : > { %v889_v25 = vpack.c.bf16 %v825_v21, %v825_v21  ;;  %v842_v26 = vpack.c.bf16 %v778_v22, %v778_v22 }
  0xb9   : > { %v858_v27 = vpack.c.bf16 %v794_v23, %v794_v23  ;;  %938 = vst.msk [vmem:[%s1657_s9 + $0x88] sm:$0xf] %vm903_vm1, %v873_v24 }
  0xba   : > { %954 = vst.msk [vmem:[%s1657_s9 + $0xc8] sm:$0xf] %vm903_vm1, %v889_v25  ;;  %v634_v28 = vpop.f32.mrf.mxu2 }
  0xbb   : > { %v674_v29 = vpop.f32.mrf.mxu3  ;;  %907 = vst.msk [vmem:[%s1657_s9 + $0xc] sm:$0xf] %vm903_vm1, %v842_v26  ;;  %v744_v30 = vmul.f32 %v1643_v34, %v634_v28  ;;  %v557_v32 = vpop.f32.mrf.mxu0 }
  0xbc   : > { %v760_v31 = vmul.f32 %v1643_v34, %v674_v29  ;;  %v597_v33 = vpop.f32.mrf.mxu1  ;;  %923 = vst.msk [vmem:[%s1657_s9 + $0x4c] sm:$0xf] %vm903_vm1, %v858_v27  ;;  %v713_v36 = vmul.f32 %v1643_v34, %v557_v32 }
  0xbd   : > { %v729_v37 = vmul.f32 %v1643_v34, %v597_v33  ;;  %v810_v38 = vadd.f32 %v1649_v35, %v744_v30 }
  0xbe   : > { %v826_v39 = vadd.f32 %v1649_v35, %v760_v31  ;;  %v779_v40 = vadd.f32 %v1649_v35, %v713_v36 }
  0xbf   : > { %v795_v41 = vadd.f32 %v1649_v35, %v729_v37  ;;  %v874_v42 = vpack.c.bf16 %v810_v38, %v810_v38 }
  0xc0   : > { %v890_v43 = vpack.c.bf16 %v826_v39, %v826_v39  ;;  %v843_v44 = vpack.c.bf16 %v779_v40, %v779_v40 }
  0xc1   : > { %v859_v45 = vpack.c.bf16 %v795_v41, %v795_v41  ;;  %939 = vst.msk [vmem:[%s1657_s9 + $0x8c] sm:$0xf] %vm903_vm1, %v874_v42 }
  0xc2   : > { %955 = vst.msk [vmem:[%s1657_s9 + $0xcc] sm:$0xf] %vm903_vm1, %v890_v43  ;;  %v637_v46 = vpop.f32.mrf.mxu2 }
  0xc3   : > { %v677_v47 = vpop.f32.mrf.mxu3  ;;  %908 = vst.msk [vmem:[%s1657_s9 + $0x10] sm:$0xf] %vm903_vm1, %v843_v44  ;;  %v745_v48 = vmul.f32 %v1643_v34, %v637_v46  ;;  %v559_v50 = vpop.f32.mrf.mxu0 }
  0xc4   : > { %v761_v49 = vmul.f32 %v1643_v34, %v677_v47  ;;  %v599_v51 = vpop.f32.mrf.mxu1  ;;  %924 = vst.msk [vmem:[%s1657_s9 + $0x50] sm:$0xf] %vm903_vm1, %v859_v45  ;;  %v714_v52 = vmul.f32 %v1643_v34, %v559_v50 }
  0xc5   : > { %v730_v53 = vmul.f32 %v1643_v34, %v599_v51  ;;  %v811_v54 = vadd.f32 %v1649_v35, %v745_v48 }
  0xc6   : > { %v827_v55 = vadd.f32 %v1649_v35, %v761_v49  ;;  %v780_v56 = vadd.f32 %v1649_v35, %v714_v52 }
  0xc7   : > { %v796_v57 = vadd.f32 %v1649_v35, %v730_v53  ;;  %v875_v58 = vpack.c.bf16 %v811_v54, %v811_v54 }
  0xc8   : > { %v891_v59 = vpack.c.bf16 %v827_v55, %v827_v55  ;;  %v844_v60 = vpack.c.bf16 %v780_v56, %v780_v56 }
  0xc9   : > { %v860_v61 = vpack.c.bf16 %v796_v57, %v796_v57  ;;  %940 = vst.msk [vmem:[%s1657_s9 + $0x90] sm:$0xf] %vm903_vm1, %v875_v58 }
  0xca   : > { %956 = vst.msk [vmem:[%s1657_s9 + $0xd0] sm:$0xf] %vm903_vm1, %v891_v59  ;;  %v639_v62 = vpop.f32.mrf.mxu2 }
  0xcb   : > { %v679_v63 = vpop.f32.mrf.mxu3  ;;  %909 = vst.msk [vmem:[%s1657_s9 + $0x14] sm:$0xf] %vm903_vm1, %v844_v60  ;;  %v746_v0 = vmul.f32 %v1643_v34, %v639_v62  ;;  %v562_v2 = vpop.f32.mrf.mxu0 }
  0xcc   : > { %v762_v1 = vmul.f32 %v1643_v34, %v679_v63  ;;  %v602_v3 = vpop.f32.mrf.mxu1  ;;  %925 = vst.msk [vmem:[%s1657_s9 + $0x54] sm:$0xf] %vm903_vm1, %v860_v61  ;;  %v715_v4 = vmul.f32 %v1643_v34, %v562_v2 }
  0xcd   : > { %v731_v5 = vmul.f32 %v1643_v34, %v602_v3  ;;  %v812_v6 = vadd.f32 %v1649_v35, %v746_v0 }
  0xce   : > { %v828_v7 = vadd.f32 %v1649_v35, %v762_v1  ;;  %v781_v8 = vadd.f32 %v1649_v35, %v715_v4 }
  0xcf   : > { %v797_v9 = vadd.f32 %v1649_v35, %v731_v5  ;;  %v876_v10 = vpack.c.bf16 %v812_v6, %v812_v6 }
  0xd0   : > { %v892_v11 = vpack.c.bf16 %v828_v7, %v828_v7  ;;  %v845_v12 = vpack.c.bf16 %v781_v8, %v781_v8 }
  0xd1   : > { %v861_v13 = vpack.c.bf16 %v797_v9, %v797_v9  ;;  %941 = vst.msk [vmem:[%s1657_s9 + $0x94] sm:$0xf] %vm903_vm1, %v876_v10 }
  0xd2   : > { %957 = vst.msk [vmem:[%s1657_s9 + $0xd4] sm:$0xf] %vm903_vm1, %v892_v11  ;;  %v642_v14 = vpop.f32.mrf.mxu2 }
  0xd3   : > { %v682_v15 = vpop.f32.mrf.mxu3  ;;  %910 = vst.msk [vmem:[%s1657_s9 + $0x18] sm:$0xf] %vm903_vm1, %v845_v12  ;;  %v747_v16 = vmul.f32 %v1643_v34, %v642_v14  ;;  %v564_v18 = vpop.f32.mrf.mxu0 }
  0xd4   : > { %v763_v17 = vmul.f32 %v1643_v34, %v682_v15  ;;  %v604_v19 = vpop.f32.mrf.mxu1  ;;  %926 = vst.msk [vmem:[%s1657_s9 + $0x58] sm:$0xf] %vm903_vm1, %v861_v13  ;;  %v716_v20 = vmul.f32 %v1643_v34, %v564_v18 }
  0xd5   : > { %v732_v21 = vmul.f32 %v1643_v34, %v604_v19  ;;  %v813_v22 = vadd.f32 %v1649_v35, %v747_v16 }
  0xd6   : > { %v829_v23 = vadd.f32 %v1649_v35, %v763_v17  ;;  %v782_v24 = vadd.f32 %v1649_v35, %v716_v20 }
  0xd7   : > { %v798_v25 = vadd.f32 %v1649_v35, %v732_v21  ;;  %v877_v26 = vpack.c.bf16 %v813_v22, %v813_v22 }
  0xd8   : > { %v893_v27 = vpack.c.bf16 %v829_v23, %v829_v23  ;;  %v846_v28 = vpack.c.bf16 %v782_v24, %v782_v24 }
  0xd9   : > { %v862_v29 = vpack.c.bf16 %v798_v25, %v798_v25  ;;  %942 = vst.msk [vmem:[%s1657_s9 + $0x98] sm:$0xf] %vm903_vm1, %v877_v26 }
  0xda   : > { %958 = vst.msk [vmem:[%s1657_s9 + $0xd8] sm:$0xf] %vm903_vm1, %v893_v27  ;;  %v644_v30 = vpop.f32.mrf.mxu2 }
  0xdb   : > { %v684_v31 = vpop.f32.mrf.mxu3  ;;  %911 = vst.msk [vmem:[%s1657_s9 + $0x1c] sm:$0xf] %vm903_vm1, %v846_v28  ;;  %v748_v32 = vmul.f32 %v1643_v34, %v644_v30  ;;  %v567_v36 = vpop.f32.mrf.mxu0 }
  0xdc   : > { %v764_v33 = vmul.f32 %v1643_v34, %v684_v31  ;;  %v607_v37 = vpop.f32.mrf.mxu1  ;;  %927 = vst.msk [vmem:[%s1657_s9 + $0x5c] sm:$0xf] %vm903_vm1, %v862_v29  ;;  %v717_v38 = vmul.f32 %v1643_v34, %v567_v36 }
  0xdd   : > { %v733_v39 = vmul.f32 %v1643_v34, %v607_v37  ;;  %v814_v40 = vadd.f32 %v1649_v35, %v748_v32 }
  0xde   : > { %v830_v41 = vadd.f32 %v1649_v35, %v764_v33  ;;  %v783_v42 = vadd.f32 %v1649_v35, %v717_v38 }
  0xdf   : > { %v799_v43 = vadd.f32 %v1649_v35, %v733_v39  ;;  %v878_v44 = vpack.c.bf16 %v814_v40, %v814_v40 }
  0xe0   : > { %v894_v45 = vpack.c.bf16 %v830_v41, %v830_v41  ;;  %v847_v46 = vpack.c.bf16 %v783_v42, %v783_v42 }
  0xe1   : > { %v863_v47 = vpack.c.bf16 %v799_v43, %v799_v43  ;;  %943 = vst.msk [vmem:[%s1657_s9 + $0x9c] sm:$0xf] %vm903_vm1, %v878_v44 }
  0xe2   : > { %959 = vst.msk [vmem:[%s1657_s9 + $0xdc] sm:$0xf] %vm903_vm1, %v894_v45  ;;  %v647_v48 = vpop.f32.mrf.mxu2 }
  0xe3   : > { %v687_v49 = vpop.f32.mrf.mxu3  ;;  %912 = vst.msk [vmem:[%s1657_s9 + $0x20] sm:$0xf] %vm903_vm1, %v847_v46  ;;  %v749_v50 = vmul.f32 %v1643_v34, %v647_v48  ;;  %v569_v52 = vpop.f32.mrf.mxu0 }
  0xe4   : > { %v765_v51 = vmul.f32 %v1643_v34, %v687_v49  ;;  %v609_v53 = vpop.f32.mrf.mxu1  ;;  %928 = vst.msk [vmem:[%s1657_s9 + $0x60] sm:$0xf] %vm903_vm1, %v863_v47  ;;  %v718_v54 = vmul.f32 %v1643_v34, %v569_v52 }
  0xe5   : > { %v734_v55 = vmul.f32 %v1643_v34, %v609_v53  ;;  %v815_v56 = vadd.f32 %v1649_v35, %v749_v50 }
  0xe6   : > { %v831_v57 = vadd.f32 %v1649_v35, %v765_v51  ;;  %v784_v58 = vadd.f32 %v1649_v35, %v718_v54 }
  0xe7   : > { %v800_v59 = vadd.f32 %v1649_v35, %v734_v55  ;;  %v879_v60 = vpack.c.bf16 %v815_v56, %v815_v56 }
  0xe8   : > { %v895_v61 = vpack.c.bf16 %v831_v57, %v831_v57  ;;  %v848_v62 = vpack.c.bf16 %v784_v58, %v784_v58 }
  0xe9   : > { %v864_v63 = vpack.c.bf16 %v800_v59, %v800_v59  ;;  %944 = vst.msk [vmem:[%s1657_s9 + $0xa0] sm:$0xf] %vm903_vm1, %v879_v60 }
  0xea   : > { %960 = vst.msk [vmem:[%s1657_s9 + $0xe0] sm:$0xf] %vm903_vm1, %v895_v61  ;;  %v649_v0 = vpop.f32.mrf.mxu2 }
  0xeb   : > { %v689_v1 = vpop.f32.mrf.mxu3  ;;  %913 = vst.msk [vmem:[%s1657_s9 + $0x24] sm:$0xf] %vm903_vm1, %v848_v62  ;;  %v750_v2 = vmul.f32 %v1643_v34, %v649_v0  ;;  %v572_v4 = vpop.f32.mrf.mxu0 }
  0xec   : > { %v766_v3 = vmul.f32 %v1643_v34, %v689_v1  ;;  %v612_v5 = vpop.f32.mrf.mxu1  ;;  %929 = vst.msk [vmem:[%s1657_s9 + $0x64] sm:$0xf] %vm903_vm1, %v864_v63  ;;  %v719_v6 = vmul.f32 %v1643_v34, %v572_v4 }
  0xed   : > { %v735_v7 = vmul.f32 %v1643_v34, %v612_v5  ;;  %v816_v8 = vadd.f32 %v1649_v35, %v750_v2 }
  0xee   : > { %v832_v9 = vadd.f32 %v1649_v35, %v766_v3  ;;  %v785_v10 = vadd.f32 %v1649_v35, %v719_v6 }
  0xef   : > { %v801_v11 = vadd.f32 %v1649_v35, %v735_v7  ;;  %v880_v12 = vpack.c.bf16 %v816_v8, %v816_v8 }
  0xf0   : > { %v896_v13 = vpack.c.bf16 %v832_v9, %v832_v9  ;;  %v849_v14 = vpack.c.bf16 %v785_v10, %v785_v10 }
  0xf1   : > { %v865_v15 = vpack.c.bf16 %v801_v11, %v801_v11  ;;  %945 = vst.msk [vmem:[%s1657_s9 + $0xa4] sm:$0xf] %vm903_vm1, %v880_v12 }
  0xf2   : > { %961 = vst.msk [vmem:[%s1657_s9 + $0xe4] sm:$0xf] %vm903_vm1, %v896_v13  ;;  %v652_v16 = vpop.f32.mrf.mxu2 }
  0xf3   : > { %v692_v17 = vpop.f32.mrf.mxu3  ;;  %914 = vst.msk [vmem:[%s1657_s9 + $0x28] sm:$0xf] %vm903_vm1, %v849_v14  ;;  %v751_v18 = vmul.f32 %v1643_v34, %v652_v16  ;;  %v574_v20 = vpop.f32.mrf.mxu0 }
  0xf4   : > { %v767_v19 = vmul.f32 %v1643_v34, %v692_v17  ;;  %v614_v21 = vpop.f32.mrf.mxu1  ;;  %930 = vst.msk [vmem:[%s1657_s9 + $0x68] sm:$0xf] %vm903_vm1, %v865_v15  ;;  %v720_v22 = vmul.f32 %v1643_v34, %v574_v20 }
  0xf5   : > { %v736_v23 = vmul.f32 %v1643_v34, %v614_v21  ;;  %v817_v24 = vadd.f32 %v1649_v35, %v751_v18 }
  0xf6   : > { %v833_v25 = vadd.f32 %v1649_v35, %v767_v19  ;;  %v786_v26 = vadd.f32 %v1649_v35, %v720_v22 }
  0xf7   : > { %v802_v27 = vadd.f32 %v1649_v35, %v736_v23  ;;  %v881_v28 = vpack.c.bf16 %v817_v24, %v817_v24 }
  0xf8   : > { %v897_v29 = vpack.c.bf16 %v833_v25, %v833_v25  ;;  %v850_v30 = vpack.c.bf16 %v786_v26, %v786_v26 }
  0xf9   : > { %v866_v31 = vpack.c.bf16 %v802_v27, %v802_v27  ;;  %946 = vst.msk [vmem:[%s1657_s9 + $0xa8] sm:$0xf] %vm903_vm1, %v881_v28 }
  0xfa   : > { %962 = vst.msk [vmem:[%s1657_s9 + $0xe8] sm:$0xf] %vm903_vm1, %v897_v29  ;;  %v654_v32 = vpop.f32.mrf.mxu2 }
  0xfb   : > { %v694_v33 = vpop.f32.mrf.mxu3  ;;  %915 = vst.msk [vmem:[%s1657_s9 + $0x2c] sm:$0xf] %vm903_vm1, %v850_v30  ;;  %v752_v36 = vmul.f32 %v1643_v34, %v654_v32  ;;  %v577_v38 = vpop.f32.mrf.mxu0 }
  0xfc   : > { %v768_v37 = vmul.f32 %v1643_v34, %v694_v33  ;;  %v617_v39 = vpop.f32.mrf.mxu1  ;;  %931 = vst.msk [vmem:[%s1657_s9 + $0x6c] sm:$0xf] %vm903_vm1, %v866_v31  ;;  %v721_v40 = vmul.f32 %v1643_v34, %v577_v38 }
  0xfd   : > { %v737_v41 = vmul.f32 %v1643_v34, %v617_v39  ;;  %v818_v42 = vadd.f32 %v1649_v35, %v752_v36 }
  0xfe   : > { %v834_v43 = vadd.f32 %v1649_v35, %v768_v37  ;;  %v787_v44 = vadd.f32 %v1649_v35, %v721_v40 }
  0xff   : > { %v803_v45 = vadd.f32 %v1649_v35, %v737_v41  ;;  %v882_v46 = vpack.c.bf16 %v818_v42, %v818_v42 }
 0x100   : > { %v898_v47 = vpack.c.bf16 %v834_v43, %v834_v43  ;;  %v851_v48 = vpack.c.bf16 %v787_v44, %v787_v44 }
 0x101   : > { %v867_v49 = vpack.c.bf16 %v803_v45, %v803_v45  ;;  %947 = vst.msk [vmem:[%s1657_s9 + $0xac] sm:$0xf] %vm903_vm1, %v882_v46 }
 0x102   : > { %963 = vst.msk [vmem:[%s1657_s9 + $0xec] sm:$0xf] %vm903_vm1, %v898_v47  ;;  %v657_v50 = vpop.f32.mrf.mxu2 }
 0x103   : > { %v697_v51 = vpop.f32.mrf.mxu3  ;;  %916 = vst.msk [vmem:[%s1657_s9 + $0x30] sm:$0xf] %vm903_vm1, %v851_v48  ;;  %v753_v52 = vmul.f32 %v1643_v34, %v657_v50  ;;  %v579_v54 = vpop.f32.mrf.mxu0 }
 0x104   : > { %v769_v53 = vmul.f32 %v1643_v34, %v697_v51  ;;  %v619_v55 = vpop.f32.mrf.mxu1  ;;  %932 = vst.msk [vmem:[%s1657_s9 + $0x70] sm:$0xf] %vm903_vm1, %v867_v49  ;;  %v722_v56 = vmul.f32 %v1643_v34, %v579_v54 }
 0x105   : > { %v738_v57 = vmul.f32 %v1643_v34, %v619_v55  ;;  %v819_v58 = vadd.f32 %v1649_v35, %v753_v52 }
 0x106   : > { %v835_v59 = vadd.f32 %v1649_v35, %v769_v53  ;;  %v788_v60 = vadd.f32 %v1649_v35, %v722_v56 }
 0x107   : > { %v804_v61 = vadd.f32 %v1649_v35, %v738_v57  ;;  %v883_v62 = vpack.c.bf16 %v819_v58, %v819_v58 }
 0x108   : > { %v899_v63 = vpack.c.bf16 %v835_v59, %v835_v59  ;;  %v852_v0 = vpack.c.bf16 %v788_v60, %v788_v60 }
 0x109   : > { %v868_v1 = vpack.c.bf16 %v804_v61, %v804_v61  ;;  %948 = vst.msk [vmem:[%s1657_s9 + $0xb0] sm:$0xf] %vm903_vm1, %v883_v62 }
 0x10a   : > { %964 = vst.msk [vmem:[%s1657_s9 + $0xf0] sm:$0xf] %vm903_vm1, %v899_v63  ;;  %v659_v2 = vpop.f32.mrf.mxu2 }
 0x10b   : > { %v699_v3 = vpop.f32.mrf.mxu3  ;;  %917 = vst.msk [vmem:[%s1657_s9 + $0x34] sm:$0xf] %vm903_vm1, %v852_v0  ;;  %v754_v4 = vmul.f32 %v1643_v34, %v659_v2  ;;  %v582_v6 = vpop.f32.mrf.mxu0 }
 0x10c   : > { %v770_v5 = vmul.f32 %v1643_v34, %v699_v3  ;;  %v622_v7 = vpop.f32.mrf.mxu1  ;;  %933 = vst.msk [vmem:[%s1657_s9 + $0x74] sm:$0xf] %vm903_vm1, %v868_v1  ;;  %v723_v8 = vmul.f32 %v1643_v34, %v582_v6 }
 0x10d   : > { %v739_v9 = vmul.f32 %v1643_v34, %v622_v7  ;;  %v820_v10 = vadd.f32 %v1649_v35, %v754_v4 }
 0x10e   : > { %v836_v11 = vadd.f32 %v1649_v35, %v770_v5  ;;  %v789_v12 = vadd.f32 %v1649_v35, %v723_v8 }
 0x10f   : > { %v805_v13 = vadd.f32 %v1649_v35, %v739_v9  ;;  %v884_v14 = vpack.c.bf16 %v820_v10, %v820_v10 }
 0x110   : > { %v900_v15 = vpack.c.bf16 %v836_v11, %v836_v11  ;;  %v853_v16 = vpack.c.bf16 %v789_v12, %v789_v12 }
 0x111   : > { %v869_v17 = vpack.c.bf16 %v805_v13, %v805_v13  ;;  %949 = vst.msk [vmem:[%s1657_s9 + $0xb4] sm:$0xf] %vm903_vm1, %v884_v14 }
 0x112   : > { %965 = vst.msk [vmem:[%s1657_s9 + $0xf4] sm:$0xf] %vm903_vm1, %v900_v15  ;;  %v662_v18 = vpop.f32.mrf.mxu2 }
 0x113   : > { %v702_v19 = vpop.f32.mrf.mxu3  ;;  %918 = vst.msk [vmem:[%s1657_s9 + $0x38] sm:$0xf] %vm903_vm1, %v853_v16  ;;  %v755_v20 = vmul.f32 %v1643_v34, %v662_v18  ;;  %v584_v22 = vpop.f32.mrf.mxu0 }
 0x114   : > { %v771_v21 = vmul.f32 %v1643_v34, %v702_v19  ;;  %v624_v23 = vpop.f32.mrf.mxu1  ;;  %934 = vst.msk [vmem:[%s1657_s9 + $0x78] sm:$0xf] %vm903_vm1, %v869_v17  ;;  %v724_v24 = vmul.f32 %v1643_v34, %v584_v22 }
 0x115   : > { %v740_v25 = vmul.f32 %v1643_v34, %v624_v23  ;;  %v821_v26 = vadd.f32 %v1649_v35, %v755_v20 }
 0x116   : > { %v837_v27 = vadd.f32 %v1649_v35, %v771_v21  ;;  %v790_v28 = vadd.f32 %v1649_v35, %v724_v24 }
 0x117   : > { %v806_v29 = vadd.f32 %v1649_v35, %v740_v25  ;;  %v885_v30 = vpack.c.bf16 %v821_v26, %v821_v26 }
 0x118   : > { %v901_v31 = vpack.c.bf16 %v837_v27, %v837_v27  ;;  %v854_v32 = vpack.c.bf16 %v790_v28, %v790_v28 }
 0x119   : > { %v870_v33 = vpack.c.bf16 %v806_v29, %v806_v29  ;;  %950 = vst.msk [vmem:[%s1657_s9 + $0xb8] sm:$0xf] %vm903_vm1, %v885_v30 }
 0x11a   : > { %966 = vst.msk [vmem:[%s1657_s9 + $0xf8] sm:$0xf] %vm903_vm1, %v901_v31  ;;  %v664_v36 = vpop.f32.mrf.mxu2 }
 0x11b   : > { %v704_v37 = vpop.f32.mrf.mxu3  ;;  %919 = vst.msk [vmem:[%s1657_s9 + $0x3c] sm:$0xf] %vm903_vm1, %v854_v32  ;;  %v756_v38 = vmul.f32 %v1643_v34, %v664_v36 }
 0x11c   : > { %v772_v39 = vmul.f32 %v1643_v34, %v704_v37  ;;  %935 = vst.msk [vmem:[%s1657_s9 + $0x7c] sm:$0xf] %vm903_vm1, %v870_v33 }
 0x11d   : > { %v822_v40 = vadd.f32 %v1649_v35, %v756_v38 }
 0x11e   : > { %v838_v41 = vadd.f32 %v1649_v35, %v772_v39 }
 0x11f   : > { %v886_v42 = vpack.c.bf16 %v822_v40, %v822_v40 }
 0x120   : > { %v902_v43 = vpack.c.bf16 %v838_v41, %v838_v41 }
 0x121   : > { %951 = vst.msk [vmem:[%s1657_s9 + $0xbc] sm:$0xf] %vm903_vm1, %v886_v42 }
 0x122   : > { %967 = vst.msk [vmem:[%s1657_s9 + $0xfc] sm:$0xf] %vm903_vm1, %v902_v43 }
 0x123   : > { %1396 = shalt.err (!%p1393_p7)
}
 0x124   : > { %s1465_s4 = smov 64   ;;  %s1466_s9 = smov 4  }
 0x125   : > { %1294 = dma.vmem_to_hbm [thread:$0]  (%p1538_p3), %s985_s24, 4096, %s987_s21, %s969_s27, %s1465_s4, %s1465_s4, %s1466_s9  }
 0x126 PF: > { %p1300_p9 = scmp.ge.s32.totalorder %s1463_s19, 2  ;;  %s1001_s16 = sand.u32 1, %s1435_s12  }
 0x127   : > { %s1002_s6 = scalar_lea.sflag [#allocation3], %s1001_s16 }
 0x128   : > { %p1297_p10 = pnand %p1300_p9, %p1547_p8 }
 0x12a   : > { %p1298_p11 = pneg %p1297_p10 }
 0x12c   : > { %1430 = dma.done.wait (%p1298_p11), %s1002_s6, 4096  }
 0x12d   : > { %1432 = vsyncadd (%p1298_p11), %s1002_s6, 4294963200  ;;  %s16_s19 = sadd.s32 1, %s1463_s19   ;;  %s1963_s12 = smov %s1439_s13 }
 0x12e   : > { %p13_p12 = scmp.ge.s32.totalorder %s16_s19, 6   ;;  %s1964_s13 = smov %s1443_s14 }
 0x12f   : > { %s1965_s14 = smov %s1556_s30  ;;  %s1966_s15 = smov %s1455_s17 }
 0x130   : > { %s1967_s16 = smov %s1459_s18  ;;  %s1968_s17 = smov %s1971_s22 }
 0x131   : > { %s1969_s18 = smov %s1975_s23  ;;  %15 = sbr.rel (!%p13_p12) target bundleno = 5 (0x5), region = 67 }
 0x136   :  { %1008 = vsyncpa [#allocation3], 1 }
 0x137   :  { %1010 = vsyncpa [#allocation3 + $0x1], 1 }

</bundles_post_ra>
